<compile_context>
chip_gen: v5e
topology: v5e:2x2
jax: 0.10.0
libtpu: 0.0.40
codegen_flags: <defaults>
</compile_context>

<pallas_src>
import functools

import jax
import jax.numpy as jnp
from jax.experimental import pallas as pl
from jax.experimental.pallas import tpu as pltpu

HIDDEN = 300          # hidden width of the PyTorch module
LANE = 128            # TPU lane width (trailing dims padded to this)
SUBLANE = 8           # TPU sublane width (batch padded to this, no-grid path)
TILE_B = 256          # batch tile for the gridded path
GRID_THRESHOLD = 512  # switch to the gridded path above this many (padded) rows


def _round_up(n, m):
    return (n + m - 1) // m * m


def mlp_kernel(x_ref, w1_ref, b1_ref, w2_ref, b2_ref, w3_ref, b3_ref, o_ref):
    """Fused 3-layer MLP on one batch tile: bf16 MXU matmuls, f32 epilogue."""
    h1 = jnp.dot(x_ref[...], w1_ref[...], preferred_element_type=jnp.float32)
    h1 = jnp.maximum(h1 + b1_ref[...], 0.0).astype(jnp.bfloat16)
    h2 = jnp.dot(h1, w2_ref[...], preferred_element_type=jnp.float32)
    h2 = jnp.maximum(h2 + b2_ref[...], 0.0).astype(jnp.bfloat16)
    o = jnp.dot(h2, w3_ref[...], preferred_element_type=jnp.float32)
    o_ref[...] = (o + b3_ref[...]).astype(o_ref.dtype)


@functools.partial(jax.jit, static_argnames=("n_out",))
def neural_net_forward(x, padded_params, n_out):
    """x: (B, n_in) f32.  padded_params: lane-padded bf16 weights / f32 biases."""
    B, n_in = x.shape
    n_in_pad = padded_params["w1"].shape[0]
    hid_pad = padded_params["w2"].shape[0]
    n_out_pad = padded_params["w3"].shape[1]

    args = (padded_params["w1"], padded_params["b1"],
            padded_params["w2"], padded_params["b2"],
            padded_params["w3"], padded_params["b3"])

    if _round_up(B, SUBLANE) <= GRID_THRESHOLD:
        # --- small batch: everything resident in VMEM, single invocation ---
        B_pad = _round_up(B, SUBLANE)
        x_pad = jnp.zeros((B_pad, n_in_pad), jnp.bfloat16)
        x_pad = x_pad.at[:B, :n_in].set(x.astype(jnp.bfloat16))

        vmem = pl.BlockSpec(memory_space=pltpu.MemorySpace.VMEM)
        out = pl.pallas_call(
            mlp_kernel,
            out_shape=jax.ShapeDtypeStruct((B_pad, n_out_pad), jnp.float32),
            in_specs=[vmem] * 7,
            out_specs=vmem,
        )(x_pad, *args)
    else:
        # --- large batch: pipeline activation tiles, keep weights resident ---
        B_pad = _round_up(B, TILE_B)
        x_pad = jnp.zeros((B_pad, n_in_pad), jnp.bfloat16)
        x_pad = x_pad.at[:B, :n_in].set(x.astype(jnp.bfloat16))

        resident = lambda shape: pl.BlockSpec(shape, lambda i: (0, 0))
        out = pl.pallas_call(
            mlp_kernel,
            out_shape=jax.ShapeDtypeStruct((B_pad, n_out_pad), jnp.float32),
            grid=(B_pad // TILE_B,),
            in_specs=[
                pl.BlockSpec((TILE_B, n_in_pad), lambda i: (i, 0)),
                resident((n_in_pad, hid_pad)), resident((1, hid_pad)),
                resident((hid_pad, hid_pad)), resident((1, hid_pad)),
                resident((hid_pad, n_out_pad)), resident((1, n_out_pad)),
            ],
            out_specs=pl.BlockSpec((TILE_B, n_out_pad), lambda i: (i, 0)),
            compiler_params=pltpu.CompilerParams(
                dimension_semantics=("parallel",)),
        )(x_pad, *args)

    return out[:B, :n_out]


def init_params(key, n_in, n_out):
    """Deterministic f32 init, PyTorch-Linear style U(-1/sqrt(fan_in), +1/sqrt(fan_in))."""
    ks = jax.random.split(key, 6)

    def linear(kw, kb, fan_in, fan_out):
        bound = 1.0 / jnp.sqrt(fan_in)
        w = jax.random.uniform(kw, (fan_in, fan_out), jnp.float32, -bound, bound)
        b = jax.random.uniform(kb, (1, fan_out), jnp.float32, -bound, bound)
        return w, b

    w1, b1 = linear(ks[0], ks[1], n_in, HIDDEN)
    w2, b2 = linear(ks[2], ks[3], HIDDEN, HIDDEN)
    w3, b3 = linear(ks[4], ks[5], HIDDEN, n_out)
    return {"w1": w1, "b1": b1, "w2": w2, "b2": b2, "w3": w3, "b3": b3}


def pad_params(p):
    """Zero-pad weights to lane multiples (bf16 for the MXU) and biases (f32)."""
    n_in = p["w1"].shape[0]
    n_out = p["w3"].shape[1]
    n_in_pad = _round_up(n_in, LANE)
    hid_pad = _round_up(HIDDEN, LANE)
    n_out_pad = _round_up(n_out, LANE)

    def pad_w(w, r, c):
        out = jnp.zeros((r, c), jnp.bfloat16)
        return out.at[: w.shape[0], : w.shape[1]].set(w.astype(jnp.bfloat16))

    def pad_b(b, c):
        out = jnp.zeros((1, c), jnp.float32)
        return out.at[:, : b.shape[1]].set(b)

    return {
        "w1": pad_w(p["w1"], n_in_pad, hid_pad), "b1": pad_b(p["b1"], hid_pad),
        "w2": pad_w(p["w2"], hid_pad, hid_pad), "b2": pad_b(p["b2"], hid_pad),
        "w3": pad_w(p["w3"], hid_pad, n_out_pad), "b3": pad_b(p["b3"], n_out_pad),
    }


def reference_forward_f32(x, p):
    h = jnp.maximum(x @ p["w1"] + p["b1"], 0.0)
    h = jnp.maximum(h @ p["w2"] + p["b2"], 0.0)
    return h @ p["w3"] + p["b3"]


def reference_forward_bf16(x, p):
    # Mirrors the kernel numerics: bf16 operands, f32 accumulation / epilogue.
    h = jnp.dot(x.astype(jnp.bfloat16), p["w1"].astype(jnp.bfloat16),
                preferred_element_type=jnp.float32)
    h = jnp.maximum(h + p["b1"], 0.0).astype(jnp.bfloat16)
    h = jnp.dot(h, p["w2"].astype(jnp.bfloat16), preferred_element_type=jnp.float32)
    h = jnp.maximum(h + p["b2"], 0.0).astype(jnp.bfloat16)
    o = jnp.dot(h, p["w3"].astype(jnp.bfloat16), preferred_element_type=jnp.float32)
    return o + p["b3"]


if __name__ == "__main__":
    key = jax.random.PRNGKey(0)
    k_x, k_x2, k_p = jax.random.split(key, 3)

    n_inputs, n_outputs = 32, 16
    params = init_params(k_p, n_inputs, n_outputs)
    padded = pad_params(params)

    # --- small-batch (no-grid) path ---
    batch = 16
    x = jax.random.normal(k_x, (batch, n_inputs), jnp.float32)
    out = jax.block_until_ready(neural_net_forward(x, padded, n_outputs))
    assert out.shape == (batch, n_outputs)
    assert jnp.allclose(out, reference_forward_bf16(x, params), atol=1e-3, rtol=1e-3), \
        "small-batch mismatch vs bf16 reference"
    assert jnp.allclose(out, reference_forward_f32(x, params), atol=5e-2, rtol=5e-2), \
        "small-batch mismatch vs f32 reference"

    # --- large-batch (gridded, batch-tiled) path ---
    batch_big = 600  # not a multiple of TILE_B -> exercises batch padding too
    x2 = jax.random.normal(k_x2, (batch_big, n_inputs), jnp.float32)
    out2 = jax.block_until_ready(neural_net_forward(x2, padded, n_outputs))
    assert out2.shape == (batch_big, n_outputs)
    assert jnp.allclose(out2, reference_forward_bf16(x2, params), atol=1e-3, rtol=1e-3), \
        "large-batch mismatch vs bf16 reference"
    assert jnp.allclose(out2, reference_forward_f32(x2, params), atol=5e-2, rtol=5e-2), \
        "large-batch mismatch vs f32 reference"

    print("KERNEL_OK")
</pallas_src>

<mosaic_0001>
module attributes {stable_mosaic.version = 11 : i64} {
  func.func @mlp_kernel(%arg0: memref<16x128xbf16, #tpu.memory_space<vmem>>, %arg1: memref<128x384xbf16, #tpu.memory_space<vmem>>, %arg2: memref<1x384xf32, #tpu.memory_space<vmem>>, %arg3: memref<384x384xbf16, #tpu.memory_space<vmem>>, %arg4: memref<1x384xf32, #tpu.memory_space<vmem>>, %arg5: memref<384x128xbf16, #tpu.memory_space<vmem>>, %arg6: memref<1x128xf32, #tpu.memory_space<vmem>>, %arg7: memref<16x128xf32, #tpu.memory_space<vmem>>) attributes {dimension_semantics = [], scalar_prefetch = 0 : i64, scratch_operands = 0 : i64, tpu.core_type = #tpu.core_type<tc>} {
    %c0 = arith.constant 0 : index
    %c0_0 = arith.constant 0 : index
    %0 = vector.load %arg0[%c0, %c0_0] : memref<16x128xbf16, #tpu.memory_space<vmem>>, vector<16x128xbf16>
    %c0_1 = arith.constant 0 : index
    %c0_2 = arith.constant 0 : index
    %1 = vector.load %arg1[%c0_1, %c0_2] : memref<128x384xbf16, #tpu.memory_space<vmem>>, vector<128x384xbf16>
    %cst = arith.constant dense<0.000000e+00> : vector<16x384xf32>
    %2 = tpu.matmul %0, %1, %cst {dimension_numbers = #tpu.dot_dimension_numbers<[1], [0], [0], [1], [0, 0, 1, 1], [], []>} : vector<16x128xbf16>, vector<128x384xbf16>, vector<16x384xf32> -> vector<16x384xf32>
    %c0_3 = arith.constant 0 : index
    %c0_4 = arith.constant 0 : index
    %3 = vector.load %arg2[%c0_3, %c0_4] : memref<1x384xf32, #tpu.memory_space<vmem>>, vector<1x384xf32>
    %4 = vector.broadcast %3 : vector<1x384xf32> to vector<16x384xf32>
    %5 = arith.addf %2, %4 : vector<16x384xf32>
    %cst_5 = arith.constant 0.000000e+00 : f32
    %6 = vector.broadcast %cst_5 : f32 to vector<16x384xf32>
    %7 = arith.maximumf %5, %6 : vector<16x384xf32>
    %8 = arith.truncf %7 : vector<16x384xf32> to vector<16x384xbf16>
    %c0_6 = arith.constant 0 : index
    %c0_7 = arith.constant 0 : index
    %9 = vector.load %arg3[%c0_6, %c0_7] : memref<384x384xbf16, #tpu.memory_space<vmem>>, vector<384x384xbf16>
    %cst_8 = arith.constant dense<0.000000e+00> : vector<16x384xf32>
    %10 = tpu.matmul %8, %9, %cst_8 {dimension_numbers = #tpu.dot_dimension_numbers<[1], [0], [0], [1], [0, 0, 1, 1], [], []>} : vector<16x384xbf16>, vector<384x384xbf16>, vector<16x384xf32> -> vector<16x384xf32>
    %c0_9 = arith.constant 0 : index
    %c0_10 = arith.constant 0 : index
    %11 = vector.load %arg4[%c0_9, %c0_10] : memref<1x384xf32, #tpu.memory_space<vmem>>, vector<1x384xf32>
    %12 = vector.broadcast %11 : vector<1x384xf32> to vector<16x384xf32>
    %13 = arith.addf %10, %12 : vector<16x384xf32>
    %cst_11 = arith.constant 0.000000e+00 : f32
    %14 = vector.broadcast %cst_11 : f32 to vector<16x384xf32>
    %15 = arith.maximumf %13, %14 : vector<16x384xf32>
    %16 = arith.truncf %15 : vector<16x384xf32> to vector<16x384xbf16>
    %c0_12 = arith.constant 0 : index
    %c0_13 = arith.constant 0 : index
    %17 = vector.load %arg5[%c0_12, %c0_13] : memref<384x128xbf16, #tpu.memory_space<vmem>>, vector<384x128xbf16>
    %cst_14 = arith.constant dense<0.000000e+00> : vector<16x128xf32>
    %18 = tpu.matmul %16, %17, %cst_14 {dimension_numbers = #tpu.dot_dimension_numbers<[1], [0], [0], [1], [0, 0, 1, 1], [], []>} : vector<16x384xbf16>, vector<384x128xbf16>, vector<16x128xf32> -> vector<16x128xf32>
    %c0_15 = arith.constant 0 : index
    %c0_16 = arith.constant 0 : index
    %19 = vector.load %arg6[%c0_15, %c0_16] : memref<1x128xf32, #tpu.memory_space<vmem>>, vector<1x128xf32>
    %20 = vector.broadcast %19 : vector<1x128xf32> to vector<16x128xf32>
    %21 = arith.addf %18, %20 : vector<16x128xf32>
    %c0_17 = arith.constant 0 : index
    %c0_18 = arith.constant 0 : index
    %22 = vector.load %arg7[%c0_17, %c0_18] : memref<16x128xf32, #tpu.memory_space<vmem>>, vector<16x128xf32>
    tpu.vector_store %arg7[%c0_17, %c0_18], %21 {strides = array<i32>} : memref<16x128xf32, #tpu.memory_space<vmem>>, vector<16x128xf32>,
    return
  }
}

</mosaic_0001>

<bundles_post_ra>
// kernel: neural_net_forward.1
= control target key start
LH: loop header
LB: loop body
LE: loop exit
PB: predicated region body
PF: predicated region fallthrough
CT: control target
= control target key end

     0   :  { %12 = vsyncpa [#allocation3], 0  ;;  %s1976_s0 = inlined_call_operand.vmem [shape: bf16[16,128], index: 0, kind: input, shape index: {}]   ;;  %s1977_s1 = inlined_call_operand.hbm [shape: bf16[128,384], index: 1, kind: input, shape index: {}]   ;;  %s1978_s2 = inlined_call_operand.vmem [shape: f32[1,384], index: 2, kind: input, shape index: {}]   ;;  %s1979_s3 = inlined_call_operand.hbm [shape: bf16[384,384], index: 3, kind: input, shape index: {}]   ;;  %s1980_s4 = inlined_call_operand.vmem [shape: f32[1,384], index: 4, kind: input, shape index: {}]   ;;  %s1981_s5 = inlined_call_operand.hbm [shape: bf16[384,128], index: 5, kind: input, shape index: {}]   ;;  %s1982_s6 = inlined_call_operand.vmem [shape: f32[1,128], index: 6, kind: input, shape index: {}]   ;;  %s1983_s7 = inlined_call_operand.hbm [shape: f32[16,128], index: 7, kind: output, shape index: {}]  }
   0x1   :  { %13 = vsyncpa [#allocation6], 0 }
   0x2   :  { %14 = vsyncpa [#allocation4], 0  ;;  %s36_s26 = sshll.u32 %s1979_s3, 4  ;;  %s1902_s27 = smov [#allocation5]   ;;  %s37_s26 = int_to_ptr.hbm [resolvable:$true] %s36_s26 }
   0x3   :  { %s38_s28 = sshll.u32 %s1902_s27, 4  ;;  %s21_s8 = sshll.u32 %s1977_s1, 4  ;;  %s39_s28 = int_to_ptr.vmem [resolvable:$true] %s38_s28  ;;  %s22_s8 = int_to_ptr.hbm [resolvable:$true] %s21_s8 }
   0x4   :  { %s1903_s9 = smov 192   ;;  %s1904_s10 = smov 12  }
   0x5   :  { %44 = dma.hbm_to_vmem [thread:$0]  %s37_s26, 9216, %s39_s28, [#allocation6], %s1903_s9, %s1903_s9, %s1904_s10  }
   0x6   :  { %s1905_s11 = smov [#allocation2]   ;;  %s51_s15 = sshll.u32 %s1981_s5, 4  ;;  %s52_s15 = int_to_ptr.hbm [resolvable:$true] %s51_s15 }
   0x7   :  { %s23_s12 = sshll.u32 %s1905_s11, 4  ;;  %s1906_s3 = smov [#allocation7]   ;;  %s24_s12 = int_to_ptr.vmem [resolvable:$true] %s23_s12 }
   0x8   :  { %29 = dma.hbm_to_vmem [thread:$0]  %s22_s8, 3072, %s24_s12, [#allocation3], %s1903_s9, %s1903_s9, %s1904_s10  }
   0x9   :  { %s53_s16 = sshll.u32 %s1906_s3, 4  ;;  %s1907_s17 = smov 64   ;;  %s54_s16 = int_to_ptr.vmem [resolvable:$true] %s53_s16 }
   0xa   :  { %s1908_s18 = smov 4  }
   0xb   :  { %59 = dma.hbm_to_vmem [thread:$0]  %s52_s15, 3072, %s54_s16, [#allocation6], %s1907_s17, %s1907_s17, %s1908_s18  }
   0xc   :  { %1896 = dma.done.wait [#allocation3], 3072  }
   0xd   :  { %1897 = vsyncadd [#allocation3], 4294964224 }
   0xe   :  { %1898 = dma.done.wait [#allocation6], 12288  }
   0xf   :  { %1899 = vsyncadd [#allocation6], 4294955008  ;;  %v1274_v0 = vld [vmem:[#allocation2 + $0xa8] sm:$0xf]  ;;  %v1691_v1 = vld [vmem:[#allocation2 + $0xb0] sm:$0xf0] }
  0x10   :  { %v1690_v2 = vld [vmem:[#allocation2 + $0xac] sm:$0xf]  ;;  %v1275_v3 = vor.u32 %v1691_v1, %v1274_v0  ;;  %v1276_v4 = vld [vmem:[#allocation2 + $0xb4] sm:$0xf0]  ;;  %v1282_v5 = vld [vmem:[#allocation2 + $0xb0] sm:$0xf] }
  0x11   :  { %v1692_v6 = vld [vmem:[#allocation2 + $0xb8] sm:$0xf0]  ;;  %v1279_v7 = vor.u32 %v1690_v2, %v1276_v4  ;;  %v1262_v9 = vld [vmem:[#allocation2 + $0x90] sm:$0xf]  ;;  %v1687_v11 = vld [vmem:[#allocation2 + $0x94] sm:$0xf] }
  0x12   :  { %v1283_v8 = vor.u32 %v1692_v6, %v1282_v5  ;;  %v1688_v10 = vld [vmem:[#allocation2 + $0x98] sm:$0xf0]  ;;  %250 = vmatpush.bf16.msra.mxu0 %v1275_v3  ;;  %v1264_v13 = vld [vmem:[#allocation2 + $0x9c] sm:$0xf0]  ;;  %v1270_v14 = vld [vmem:[#allocation2 + $0x98] sm:$0xf] }
  0x13   :  { %v1263_v12 = vor.u32 %v1688_v10, %v1262_v9  ;;  %v1689_v15 = vld [vmem:[#allocation2 + $0xa0] sm:$0xf0]  ;;  %264 = vmatpush.bf16.msra.mxu1 %v1279_v7  ;;  %v1267_v16 = vor.u32 %v1687_v11, %v1264_v13  ;;  %v1250_v18 = vld [vmem:[#allocation2 + $0x78] sm:$0xf]  ;;  %v1684_v20 = vld [vmem:[#allocation2 + $0x7c] sm:$0xf] }
  0x14   :  { %278 = vmatpush.bf16.msra.mxu2 %v1283_v8  ;;  %v1271_v17 = vor.u32 %v1689_v15, %v1270_v14  ;;  %v1685_v19 = vld [vmem:[#allocation2 + $0x80] sm:$0xf0]  ;;  %v1252_v21 = vld [vmem:[#allocation2 + $0x84] sm:$0xf0]  ;;  %v1258_v22 = vld [vmem:[#allocation2 + $0x80] sm:$0xf] }
  0x15   :  { %v1686_v23 = vld [vmem:[#allocation2 + $0x88] sm:$0xf0]  ;;  %v1251_v24 = vor.u32 %v1685_v19, %v1250_v18  ;;  %v1255_v25 = vor.u32 %v1684_v20, %v1252_v21  ;;  %v1238_v27 = vld [vmem:[#allocation2 + $0x60] sm:$0xf]  ;;  %v1681_v29 = vld [vmem:[#allocation2 + $0x64] sm:$0xf] }
  0x16   :  { %251 = vmatpush.bf16.msra.mxu0 %v1263_v12  ;;  %v1259_v26 = vor.u32 %v1686_v23, %v1258_v22  ;;  %v1682_v28 = vld [vmem:[#allocation2 + $0x68] sm:$0xf0]  ;;  %v1240_v30 = vld [vmem:[#allocation2 + $0x6c] sm:$0xf0]  ;;  %v1246_v31 = vld [vmem:[#allocation2 + $0x68] sm:$0xf] }
  0x17   :  { %265 = vmatpush.bf16.msra.mxu1 %v1267_v16  ;;  %v1683_v32 = vld [vmem:[#allocation2 + $0x70] sm:$0xf0]  ;;  %v1239_v33 = vor.u32 %v1682_v28, %v1238_v27  ;;  %v1243_v34 = vor.u32 %v1681_v29, %v1240_v30  ;;  %v1226_v36 = vld [vmem:[#allocation2 + $0x48] sm:$0xf]  ;;  %v1678_v38 = vld [vmem:[#allocation2 + $0x4c] sm:$0xf] }
  0x18   :  { %279 = vmatpush.bf16.msra.mxu2 %v1271_v17  ;;  %v1247_v35 = vor.u32 %v1683_v32, %v1246_v31  ;;  %v1679_v37 = vld [vmem:[#allocation2 + $0x50] sm:$0xf0]  ;;  %v1228_v39 = vld [vmem:[#allocation2 + $0x54] sm:$0xf0]  ;;  %v1234_v40 = vld [vmem:[#allocation2 + $0x50] sm:$0xf] }
  0x19   :  { %v1680_v41 = vld [vmem:[#allocation2 + $0x58] sm:$0xf0]  ;;  %v1214_v42 = vld [vmem:[#allocation2 + $0x30] sm:$0xf]  ;;  %v1227_v43 = vor.u32 %v1679_v37, %v1226_v36  ;;  %v1675_v45 = vld [vmem:[#allocation2 + $0x34] sm:$0xf]  ;;  %v1231_v47 = vor.u32 %v1678_v38, %v1228_v39 }
  0x1a   :  { %252 = vmatpush.bf16.msra.mxu0 %v1251_v24  ;;  %v1676_v44 = vld [vmem:[#allocation2 + $0x38] sm:$0xf0]  ;;  %v1216_v46 = vld [vmem:[#allocation2 + $0x3c] sm:$0xf0]  ;;  %v1235_v48 = vor.u32 %v1680_v41, %v1234_v40  ;;  %v1222_v49 = vld [vmem:[#allocation2 + $0x38] sm:$0xf] }
  0x1b   :  { %266 = vmatpush.bf16.msra.mxu1 %v1255_v25  ;;  %v1370_v50 = vld [vmem:[#allocation5 + $0xa8] sm:$0xf]  ;;  %v1715_v51 = vld [vmem:[#allocation5 + $0xb0] sm:$0xf0]  ;;  %v1677_v52 = vld [vmem:[#allocation2 + $0x40] sm:$0xf0]  ;;  %v1215_v56 = vor.u32 %v1676_v44, %v1214_v42  ;;  %v1219_v60 = vor.u32 %v1675_v45, %v1216_v46 }
  0x1c   :  { %280 = vmatpush.bf16.msra.mxu2 %v1259_v26  ;;  %v1371_v53 = vor.u32 %v1715_v51, %v1370_v50  ;;  %v1358_v54 = vld [vmem:[#allocation5 + $0x90] sm:$0xf]  ;;  %v1712_v55 = vld [vmem:[#allocation5 + $0x98] sm:$0xf0]  ;;  %v1202_v57 = vld [vmem:[#allocation2 + $0x18] sm:$0xf]  ;;  %v1223_v61 = vor.u32 %v1677_v52, %v1222_v49 }
  0x1d   :  { %v1673_v58 = vld [vmem:[#allocation2 + $0x20] sm:$0xf0]  ;;  %v1359_v59 = vor.u32 %v1712_v55, %v1358_v54  ;;  %v1672_v62 = vld [vmem:[#allocation2 + $0x1c] sm:$0xf]  ;;  %v1346_v63 = vld [vmem:[#allocation5 + $0x78] sm:$0xf] }
  0x1e   :  { %253 = vmatpush.bf16.msra.mxu0 %v1239_v33  ;;  %789 = vmatpush.bf16.msra.mxu3 %v1371_v53  ;;  %v1709_v0 = vld [vmem:[#allocation5 + $0x80] sm:$0xf0]  ;;  %v1204_v1 = vld [vmem:[#allocation2 + $0x24] sm:$0xf0]  ;;  %v1210_v2 = vld [vmem:[#allocation2 + $0x20] sm:$0xf]  ;;  %v1203_v4 = vor.u32 %v1673_v58, %v1202_v57 }
  0x1f   :  { %267 = vmatpush.bf16.msra.mxu1 %v1243_v34  ;;  %v1674_v3 = vld [vmem:[#allocation2 + $0x28] sm:$0xf0]  ;;  %v1190_v5 = vld [vmem:[#allocation2] sm:$0xf]  ;;  %v1669_v7 = vld [vmem:[#allocation2 + $0x4] sm:$0xf]  ;;  %v1347_v8 = vor.u32 %v1709_v0, %v1346_v63  ;;  %v1207_v9 = vor.u32 %v1672_v62, %v1204_v1 }
  0x20   :  { %281 = vmatpush.bf16.msra.mxu2 %v1247_v35  ;;  %v1670_v6 = vld [vmem:[#allocation2 + $0x8] sm:$0xf0]  ;;  %v1211_v10 = vor.u32 %v1674_v3, %v1210_v2  ;;  %v1192_v11 = vld [vmem:[#allocation2 + $0xc] sm:$0xf0]  ;;  %v1334_v12 = vld [vmem:[#allocation5 + $0x60] sm:$0xf] }
  0x21   :  { %v1706_v13 = vld [vmem:[#allocation5 + $0x68] sm:$0xf0]  ;;  %v1198_v14 = vld [vmem:[#allocation2 + $0x8] sm:$0xf]  ;;  %v1671_v15 = vld [vmem:[#allocation2 + $0x10] sm:$0xf0]  ;;  %v1191_v20 = vor.u32 %v1670_v6, %v1190_v5  ;;  %v1195_v24 = vor.u32 %v1669_v7, %v1192_v11 }
  0x22   :  { %254 = vmatpush.bf16.msra.mxu0 %v1227_v43  ;;  %790 = vmatpush.bf16.msra.mxu3 %v1359_v59  ;;  %v1466_v16 = vld [vmem:[#allocation5 + $0x168] sm:$0xf]  ;;  %v1739_v17 = vld [vmem:[#allocation5 + $0x170] sm:$0xf0]  ;;  %v1714_v18 = vld [vmem:[#allocation5 + $0xac] sm:$0xf]  ;;  %v1335_v21 = vor.u32 %v1706_v13, %v1334_v12  ;;  %v1199_v25 = vor.u32 %v1671_v15, %v1198_v14 }
  0x23   :  { %268 = vmatpush.bf16.msra.mxu1 %v1231_v47  ;;  %v1372_v19 = vld [vmem:[#allocation5 + $0xb4] sm:$0xf0]  ;;  %v1562_v22 = vld [vmem:[#allocation5 + $0x228] sm:$0xf]  ;;  %v1763_v23 = vld [vmem:[#allocation5 + $0x230] sm:$0xf0]  ;;  %v1467_v27 = vor.u32 %v1739_v17, %v1466_v16 }
  0x24   :  { %282 = vmatpush.bf16.msra.mxu2 %v1235_v48  ;;  %v1668_v26 = vld [vmem:[%s1976_s0] sm:$0xff]  ;;  %v1375_v28 = vor.u32 %v1714_v18, %v1372_v19  ;;  %v1322_v29 = vld [vmem:[#allocation5 + $0x48] sm:$0xf]  ;;  %v1703_v30 = vld [vmem:[#allocation5 + $0x50] sm:$0xf0]  ;;  %v1563_v35 = vor.u32 %v1763_v23, %v1562_v22  ;;  %s1909_s22 = smov [#allocation8]  }
  0x25   :  { %v1454_v31 = vld [vmem:[#allocation5 + $0x150] sm:$0xf]  ;;  %v1736_v32 = vld [vmem:[#allocation5 + $0x158] sm:$0xf0]  ;;  %v1711_v33 = vld [vmem:[#allocation5 + $0x94] sm:$0xf]  ;;  %v1323_v38 = vor.u32 %v1703_v30, %v1322_v29 }
  0x26   :  { %255 = vmatpush.bf16.msra.mxu0 %v1215_v56  ;;  %791 = vmatpush.bf16.msra.mxu3 %v1347_v8  ;;  %v1360_v34 = vld [vmem:[#allocation5 + $0x9c] sm:$0xf0]  ;;  %v1550_v36 = vld [vmem:[#allocation5 + $0x210] sm:$0xf]  ;;  %v1760_v37 = vld [vmem:[#allocation5 + $0x218] sm:$0xf0]  ;;  %v1455_v39 = vor.u32 %v1736_v32, %v1454_v31 }
  0x27   :  { %269 = vmatpush.bf16.msra.mxu1 %v1219_v60  ;;  %v1363_v40 = vor.u32 %v1711_v33, %v1360_v34  ;;  %v1310_v41 = vld [vmem:[#allocation5 + $0x30] sm:$0xf]  ;;  %v1700_v42 = vld [vmem:[#allocation5 + $0x38] sm:$0xf0]  ;;  %v1442_v43 = vld [vmem:[#allocation5 + $0x138] sm:$0xf]  ;;  %v1551_v47 = vor.u32 %v1760_v37, %v1550_v36 }
  0x28   :  { %283 = vmatpush.bf16.msra.mxu2 %v1223_v61  ;;  %v1733_v44 = vld [vmem:[#allocation5 + $0x140] sm:$0xf0]  ;;  %v1708_v45 = vld [vmem:[#allocation5 + $0x7c] sm:$0xf]  ;;  %v1348_v46 = vld [vmem:[#allocation5 + $0x84] sm:$0xf0]  ;;  %v1311_v50 = vor.u32 %v1700_v42, %v1310_v41 }
  0x29   :  { %v1538_v48 = vld [vmem:[#allocation5 + $0x1f8] sm:$0xf]  ;;  %v1757_v49 = vld [vmem:[#allocation5 + $0x200] sm:$0xf0]  ;;  %v1443_v51 = vor.u32 %v1733_v44, %v1442_v43  ;;  %v1351_v52 = vor.u32 %v1708_v45, %v1348_v46  ;;  %v1430_v55 = vld [vmem:[#allocation5 + $0x120] sm:$0xf] }
  0x2a   :  { %256 = vmatpush.bf16.msra.mxu0 %v1203_v4  ;;  %792 = vmatpush.bf16.msra.mxu3 %v1335_v21  ;;  %v1298_v53 = vld [vmem:[#allocation5 + $0x18] sm:$0xf]  ;;  %v1697_v54 = vld [vmem:[#allocation5 + $0x20] sm:$0xf0]  ;;  %v1730_v56 = vld [vmem:[#allocation5 + $0x128] sm:$0xf0]  ;;  %v1539_v59 = vor.u32 %v1757_v49, %v1538_v48 }
  0x2b   :  { %270 = vmatpush.bf16.msra.mxu1 %v1207_v9  ;;  %v1705_v57 = vld [vmem:[#allocation5 + $0x64] sm:$0xf]  ;;  %v1336_v58 = vld [vmem:[#allocation5 + $0x6c] sm:$0xf0]  ;;  %v1526_v60 = vld [vmem:[#allocation5 + $0x1e0] sm:$0xf]  ;;  %v1299_v62 = vor.u32 %v1697_v54, %v1298_v53  ;;  %v1431_v0 = vor.u32 %v1730_v56, %v1430_v55 }
  0x2c   :  { %284 = vmatpush.bf16.msra.mxu2 %v1211_v10  ;;  %v1754_v61 = vld [vmem:[#allocation5 + $0x1e8] sm:$0xf0]  ;;  %v1286_v63 = vld [vmem:[#allocation5] sm:$0xf]  ;;  %v1339_v1 = vor.u32 %v1705_v57, %v1336_v58  ;;  %v1418_v3 = vld [vmem:[#allocation5 + $0x108] sm:$0xf] }
  0x2d   :  { %v1694_v2 = vld [vmem:[#allocation5 + $0x8] sm:$0xf0]  ;;  %v1727_v4 = vld [vmem:[#allocation5 + $0x110] sm:$0xf0]  ;;  %v1324_v6 = vld [vmem:[#allocation5 + $0x54] sm:$0xf0]  ;;  %v1527_v8 = vor.u32 %v1754_v61, %v1526_v60 }
  0x2e   :  { %257 = vmatpush.bf16.msra.mxu0 %v1191_v20  ;;  %793 = vmatpush.bf16.msra.mxu3 %v1323_v38  ;;  %v1702_v5 = vld [vmem:[#allocation5 + $0x4c] sm:$0xf]  ;;  %v1468_v9 = vld [vmem:[#allocation5 + $0x174] sm:$0xf0]  ;;  %v1514_v10 = vld [vmem:[#allocation5 + $0x1c8] sm:$0xf]  ;;  %v1287_v12 = vor.u32 %v1694_v2, %v1286_v63  ;;  %v1419_v13 = vor.u32 %v1727_v4, %v1418_v3 }
  0x2f   :  { %271 = vmatpush.bf16.msra.mxu1 %v1195_v24  ;;  %v1738_v7 = vld [vmem:[#allocation5 + $0x16c] sm:$0xf]  ;;  %v1751_v11 = vld [vmem:[#allocation5 + $0x1d0] sm:$0xf0]  ;;  %v1327_v14 = vor.u32 %v1702_v5, %v1324_v6  ;;  %v1406_v15 = vld [vmem:[#allocation5 + $0xf0] sm:$0xf] }
  0x30   :  { %285 = vmatpush.bf16.msra.mxu2 %v1199_v25  ;;  %v1724_v16 = vld [vmem:[#allocation5 + $0xf8] sm:$0xf0]  ;;  %v1471_v17 = vor.u32 %v1738_v7, %v1468_v9  ;;  %v1699_v18 = vld [vmem:[#allocation5 + $0x34] sm:$0xf]  ;;  %v1312_v19 = vld [vmem:[#allocation5 + $0x3c] sm:$0xf0]  ;;  %v1515_v21 = vor.u32 %v1751_v11, %v1514_v10 }
  0x31   :  { %258 = vmatmul.bf16.vlgmr.msra.gmra.mxu0 %v1668_v26  ;;  %v1735_v20 = vld [vmem:[#allocation5 + $0x154] sm:$0xf]  ;;  %v1456_v22 = vld [vmem:[#allocation5 + $0x15c] sm:$0xf0]  ;;  %v1502_v23 = vld [vmem:[#allocation5 + $0x1b0] sm:$0xf]  ;;  %v1407_v25 = vor.u32 %v1724_v16, %v1406_v15 }
  0x32   :  { %803 = vmatpush.bf16.msrb.mxu0 %v1467_v27  ;;  %272 = vmatmul.bf16.vlgmr.msra.gmra.mxu1 %v1668_v26  ;;  %v1748_v24 = vld [vmem:[#allocation5 + $0x1b8] sm:$0xf0]  ;;  %v1394_v27 = vld [vmem:[#allocation5 + $0xd8] sm:$0xf]  ;;  %v1721_v29 = vld [vmem:[#allocation5 + $0xe0] sm:$0xf0] }
  0x33   :  { %817 = vmatpush.bf16.msrb.mxu1 %v1563_v35  ;;  %286 = vmatmul.bf16.vlgmr.msra.gmra.mxu2 %v1668_v26  ;;  %v1315_v26 = vor.u32 %v1699_v18, %v1312_v19  ;;  %v1696_v30 = vld [vmem:[#allocation5 + $0x1c] sm:$0xf]  ;;  %v1300_v31 = vld [vmem:[#allocation5 + $0x24] sm:$0xf0]  ;;  %v1503_v32 = vor.u32 %v1748_v24, %v1502_v23  ;;  %v1395_v35 = vor.u32 %v1721_v29, %v1394_v27  ;;  %v1382_v37 = vld [vmem:[#allocation5 + $0xc0] sm:$0xf] }
  0x34   :  { %831 = vmatpush.bf16.msrb.mxu2 %v1375_v28  ;;  %794 = vmatpush.bf16.msra.mxu3 %v1311_v50  ;;  %v1459_v28 = vor.u32 %v1735_v20, %v1456_v22  ;;  %v1732_v33 = vld [vmem:[#allocation5 + $0x13c] sm:$0xf]  ;;  %v1444_v34 = vld [vmem:[#allocation5 + $0x144] sm:$0xf0]  ;;  %v1303_v36 = vor.u32 %v1696_v30, %v1300_v31  ;;  %v1288_v41 = vld [vmem:[#allocation5 + $0xc] sm:$0xf0] }
  0x35   :  { %v1447_v38 = vor.u32 %v1732_v33, %v1444_v34  ;;  %v1729_v42 = vld [vmem:[#allocation5 + $0x124] sm:$0xf]  ;;  %v1432_v43 = vld [vmem:[#allocation5 + $0x12c] sm:$0xf0]  ;;  %v1564_v48 = vld [vmem:[#allocation5 + $0x234] sm:$0xf0] }
  0x36   :  { %804 = vmatpush.bf16.msrb.mxu0 %v1455_v39  ;;  %v1718_v39 = vld [vmem:[#allocation5 + $0xc8] sm:$0xf0]  ;;  %v1435_v46 = vor.u32 %v1729_v42, %v1432_v43  ;;  %v1474_v49 = vld [vmem:[#allocation5 + $0x170] sm:$0xf]  ;;  %v1745_v53 = vld [vmem:[#allocation5 + $0x1a0] sm:$0xf0] }
  0x37   :  { %818 = vmatpush.bf16.msrb.mxu1 %v1551_v47  ;;  %v1383_v44 = vor.u32 %v1718_v39, %v1382_v37  ;;  %v1762_v47 = vld [vmem:[#allocation5 + $0x22c] sm:$0xf]  ;;  %v1420_v57 = vld [vmem:[#allocation5 + $0x114] sm:$0xf0]  ;;  %v1552_v60 = vld [vmem:[#allocation5 + $0x21c] sm:$0xf0] }
  0x38   :  { %832 = vmatpush.bf16.msrb.mxu2 %v1363_v40  ;;  %795 = vmatpush.bf16.msra.mxu3 %v1299_v62  ;;  %v1693_v40 = vld [vmem:[#allocation5 + $0x4] sm:$0xf]  ;;  %v1567_v50 = vor.u32 %v1762_v47, %v1564_v48  ;;  %v1726_v56 = vld [vmem:[#allocation5 + $0x10c] sm:$0xf]  ;;  %v1462_v61 = vld [vmem:[#allocation5 + $0x158] sm:$0xf] }
  0x39   :  { %v1291_v45 = vor.u32 %v1693_v40, %v1288_v41  ;;  %v1423_v58 = vor.u32 %v1726_v56, %v1420_v57  ;;  %v1737_v63 = vld [vmem:[#allocation5 + $0x160] sm:$0xf0]  ;;  %v1742_v2 = vld [vmem:[#allocation5 + $0x188] sm:$0xf0]  ;;  %v1378_v3 = vld [vmem:[#allocation5 + $0xb0] sm:$0xf] }
  0x3a   :  { %805 = vmatpush.bf16.msrb.mxu0 %v1443_v51  ;;  %v1740_v51 = vld [vmem:[#allocation5 + $0x178] sm:$0xf0]  ;;  %v1723_v6 = vld [vmem:[#allocation5 + $0xf4] sm:$0xf]  ;;  %v1408_v7 = vld [vmem:[#allocation5 + $0xfc] sm:$0xf0] }
  0x3b   :  { %819 = vmatpush.bf16.msrb.mxu1 %v1539_v59  ;;  %v1475_v54 = vor.u32 %v1740_v51, %v1474_v49  ;;  %v1759_v59 = vld [vmem:[#allocation5 + $0x214] sm:$0xf]  ;;  %v1716_v5 = vld [vmem:[#allocation5 + $0xb8] sm:$0xf0]  ;;  %v1411_v9 = vor.u32 %v1723_v6, %v1408_v7  ;;  %v1540_v11 = vld [vmem:[#allocation5 + $0x204] sm:$0xf0] }
  0x3c   :  { %833 = vmatpush.bf16.msrb.mxu2 %v1351_v52  ;;  %796 = vmatpush.bf16.msra.mxu3 %v1287_v12  ;;  %v1490_v52 = vld [vmem:[#allocation5 + $0x198] sm:$0xf]  ;;  %v1555_v62 = vor.u32 %v1759_v59, %v1552_v60  ;;  %v1756_v10 = vld [vmem:[#allocation5 + $0x1fc] sm:$0xf]  ;;  %v1450_v12 = vld [vmem:[#allocation5 + $0x140] sm:$0xf] }
  0x3d   :  { %v1491_v55 = vor.u32 %v1745_v53, %v1490_v52  ;;  %v1366_v16 = vld [vmem:[#allocation5 + $0x98] sm:$0xf]  ;;  %v1720_v19 = vld [vmem:[#allocation5 + $0xdc] sm:$0xf]  ;;  %v1396_v20 = vld [vmem:[#allocation5 + $0xe4] sm:$0xf0] }
  0x3e   :  { %806 = vmatpush.bf16.msrb.mxu0 %v1431_v0  ;;  %v1478_v0 = vld [vmem:[#allocation5 + $0x180] sm:$0xf]  ;;  %v1753_v22 = vld [vmem:[#allocation5 + $0x1e4] sm:$0xf]  ;;  %v1528_v23 = vld [vmem:[#allocation5 + $0x1ec] sm:$0xf0] }
  0x3f   :  { %820 = vmatpush.bf16.msrb.mxu1 %v1527_v8  ;;  %v1479_v4 = vor.u32 %v1742_v2, %v1478_v0  ;;  %v1379_v8 = vor.u32 %v1716_v5, %v1378_v3  ;;  %v1438_v24 = vld [vmem:[#allocation5 + $0x128] sm:$0xf]  ;;  %v1710_v29 = vld [vmem:[#allocation5 + $0x88] sm:$0xf0]  ;;  %v1717_v31 = vld [vmem:[#allocation5 + $0xc4] sm:$0xf] }
  0x40   :  { %834 = vmatpush.bf16.msrb.mxu2 %v1339_v1  ;;  %845 = vmatpush.bf16.msrb.mxu3 %v1471_v17  ;;  %v1463_v1 = vor.u32 %v1737_v63, %v1462_v61  ;;  %v1713_v17 = vld [vmem:[#allocation5 + $0xa0] sm:$0xf0]  ;;  %v1750_v34 = vld [vmem:[#allocation5 + $0x1cc] sm:$0xf]  ;;  %v1342_v40 = vld [vmem:[#allocation5 + $0x68] sm:$0xf] }
  0x41   :  { %v1367_v18 = vor.u32 %v1713_v17, %v1366_v16  ;;  %v1707_v41 = vld [vmem:[#allocation5 + $0x70] sm:$0xf0]  ;;  %v1725_v47 = vld [vmem:[#allocation5 + $0x100] sm:$0xf0]  ;;  %v1330_v49 = vld [vmem:[#allocation5 + $0x50] sm:$0xf] }
  0x42   :  { %807 = vmatpush.bf16.msrb.mxu0 %v1419_v13  ;;  %v1543_v13 = vor.u32 %v1756_v10, %v1540_v11  ;;  %v1343_v42 = vor.u32 %v1707_v41, %v1342_v40  ;;  %v1747_v43 = vld [vmem:[#allocation5 + $0x1b4] sm:$0xf]  ;;  %v1744_v52 = vld [vmem:[#allocation5 + $0x19c] sm:$0xf]  ;;  %v1492_v53 = vld [vmem:[#allocation5 + $0x1a4] sm:$0xf0] }
  0x43   :  { %821 = vmatpush.bf16.msrb.mxu1 %v1515_v21  ;;  %v1399_v21 = vor.u32 %v1720_v19, %v1396_v20  ;;  %v1722_v56 = vld [vmem:[#allocation5 + $0xe8] sm:$0xf0]  ;;  %v1701_v59 = vld [vmem:[#allocation5 + $0x40] sm:$0xf0]  ;;  %v1390_v63 = vld [vmem:[#allocation5 + $0xc8] sm:$0xf] }
  0x44   :  { %835 = vmatpush.bf16.msrb.mxu2 %v1327_v14  ;;  %846 = vmatpush.bf16.msrb.mxu3 %v1459_v28  ;;  %v1734_v14 = vld [vmem:[#allocation5 + $0x148] sm:$0xf0]  ;;  %v1354_v28 = vld [vmem:[#allocation5 + $0x80] sm:$0xf]  ;;  %v1741_v60 = vld [vmem:[#allocation5 + $0x184] sm:$0xf] }
  0x45   :  { %v1451_v15 = vor.u32 %v1734_v14, %v1450_v12  ;;  %v1355_v30 = vor.u32 %v1710_v29, %v1354_v28  ;;  %v1719_v0 = vld [vmem:[#allocation5 + $0xd0] sm:$0xf0]  ;;  %v1306_v3 = vld [vmem:[#allocation5 + $0x20] sm:$0xf]  ;;  %v1758_v40 = vld [vmem:[#allocation5 + $0x208] sm:$0xf0] }
  0x46   :  { %808 = vmatpush.bf16.msrb.mxu0 %v1407_v25  ;;  %v1531_v25 = vor.u32 %v1753_v22, %v1528_v23  ;;  %v1391_v2 = vor.u32 %v1719_v0, %v1390_v63  ;;  %v108_v6 = vld [vmem:[%s1978_s2] sm:$0x7]  ;;  %v1764_v22 = vld [vmem:[#allocation5 + $0x238] sm:$0xf0]  ;;  %v1771_v41 = vld [vmem:[#allocation7 + $0x30] sm:$0xff]  ;;  %s1168_s23 = sshll.u32 %s1909_s22, 4  ;;  %s1169_s23 = int_to_ptr.vmem [resolvable:$true] %s1168_s23 }
  0x47   :  { %822 = vmatpush.bf16.msrb.mxu1 %v1503_v32  ;;  %v1384_v32 = vld [vmem:[#allocation5 + $0xcc] sm:$0xf0]  ;;  %v111_v12 = vperm.slane %v108_v6, 1  ;;  %v112_v17 = vperm.slane %v108_v6, 2  ;;  %v1768_v63 = vld [vmem:[#allocation7 + $0x18] sm:$0xff]  ;;  %s1170_s26 = sshll.u32 %s1983_s7, 4  ;;  %s1171_s26 = int_to_ptr.hbm [resolvable:$true] %s1170_s26 }
  0x48   :  { %836 = vmatpush.bf16.msrb.mxu2 %v1315_v26  ;;  %847 = vmatpush.bf16.msrb.mxu3 %v1447_v38  ;;  %v1731_v26 = vld [vmem:[#allocation5 + $0x130] sm:$0xf0]  ;;  %v1387_v33 = vor.u32 %v1717_v31, %v1384_v32  ;;  %v1728_v38 = vld [vmem:[#allocation5 + $0x118] sm:$0xf0]  ;;  %v1558_v31 = vld [vmem:[#allocation5 + $0x218] sm:$0xf] }
  0x49   :  { %v1439_v27 = vor.u32 %v1731_v26, %v1438_v24  ;;  %v1761_v32 = vld [vmem:[#allocation5 + $0x220] sm:$0xf0]  ;;  %v1779_v0 = vld [vmem:[#allocation7 + $0x70] sm:$0xff]  ;;  %s1911_s27 = smov 8  }
  0x4a   :  { %809 = vmatpush.bf16.msrb.mxu0 %v1395_v35  ;;  %v1516_v35 = vld [vmem:[#allocation5 + $0x1d4] sm:$0xf0] }
  0x4b   :  { %823 = vmatpush.bf16.msrb.mxu1 %v1491_v55  ;;  %v1519_v37 = vor.u32 %v1750_v34, %v1516_v35  ;;  %v1495_v55 = vor.u32 %v1744_v52, %v1492_v53  ;;  %v1772_v35 = vld [vmem:[#allocation7 + $0x38] sm:$0xff]  ;;  %v1749_v52 = vld [vmem:[#allocation5 + $0x1c0] sm:$0xf0] }
  0x4c   :  { %837 = vmatpush.bf16.msrb.mxu2 %v1303_v36  ;;  %848 = vmatpush.bf16.msrb.mxu3 %v1435_v46  ;;  %v1426_v36 = vld [vmem:[#allocation5 + $0x110] sm:$0xf] }
  0x4d   :  { %v1427_v39 = vor.u32 %v1728_v38, %v1426_v36  ;;  %v1559_v38 = vor.u32 %v1761_v32, %v1558_v31 }
  0x4e   :  { %810 = vmatpush.bf16.msrb.mxu0 %v1383_v44  ;;  %v1504_v44 = vld [vmem:[#allocation5 + $0x1bc] sm:$0xf0] }
  0x4f   :  { %824 = vmatpush.bf16.msrb.mxu1 %v1479_v4  ;;  %v1507_v46 = vor.u32 %v1747_v43, %v1504_v44  ;;  %v1698_v4 = vld [vmem:[#allocation5 + $0x28] sm:$0xf0] }
  0x50   :  { %838 = vmatpush.bf16.msrb.mxu2 %v1291_v45  ;;  %849 = vmatpush.bf16.msrb.mxu3 %v1423_v58  ;;  %v1414_v45 = vld [vmem:[#allocation5 + $0xf8] sm:$0xf]  ;;  %v1307_v5 = vor.u32 %v1698_v4, %v1306_v3  ;;  %v1766_v3 = vld [vmem:[#allocation7 + $0x8] sm:$0xff]  ;;  %v1777_v4 = vld [vmem:[#allocation7 + $0x60] sm:$0xff] }
  0x51   :  { %v1415_v48 = vor.u32 %v1725_v47, %v1414_v45  ;;  %v1318_v58 = vld [vmem:[#allocation5 + $0x38] sm:$0xf]  ;;  %v1534_v45 = vld [vmem:[#allocation5 + $0x1e8] sm:$0xf] }
  0x52   :  { %859 = vmatpush.bf16.msra.mxu0 %v1567_v50  ;;  %v1704_v50 = vld [vmem:[#allocation5 + $0x58] sm:$0xf0]  ;;  %v1319_v61 = vor.u32 %v1701_v59, %v1318_v58  ;;  %v1743_v58 = vld [vmem:[#allocation5 + $0x190] sm:$0xf0] }
  0x53   :  { %873 = vmatpush.bf16.msra.mxu1 %v1379_v8  ;;  %v1331_v51 = vor.u32 %v1704_v50, %v1330_v49  ;;  %v1294_v8 = vld [vmem:[#allocation5 + $0x8] sm:$0xf]  ;;  %v1752_v49 = vld [vmem:[#allocation5 + $0x1d8] sm:$0xf0] }
  0x54   :  { %887 = vmatpush.bf16.msra.mxu2 %v1475_v54  ;;  %850 = vmatpush.bf16.msrb.mxu3 %v1411_v9  ;;  %v1402_v54 = vld [vmem:[#allocation5 + $0xe0] sm:$0xf]  ;;  %v1695_v9 = vld [vmem:[#allocation5 + $0x10] sm:$0xf0] }
  0x55   :  { %v1403_v57 = vor.u32 %v1722_v56, %v1402_v54  ;;  %v1295_v11 = vor.u32 %v1695_v9, %v1294_v8  ;;  %v1498_v54 = vld [vmem:[#allocation5 + $0x1a0] sm:$0xf]  ;;  %v1787_v8 = vld [vmem:[#allocation7 + $0xb0] sm:$0xff] }
  0x56   :  { %860 = vmatpush.bf16.msra.mxu0 %v1555_v62  ;;  %v1480_v62 = vld [vmem:[#allocation5 + $0x18c] sm:$0xf0] }
  0x57   :  { %874 = vmatpush.bf16.msra.mxu1 %v1367_v18  ;;  %v1775_v9 = vld [vmem:[#allocation7 + $0x50] sm:$0xff] }
  0x58   :  { %888 = vmatpush.bf16.msra.mxu2 %v1463_v1  ;;  %851 = vmatpush.bf16.msrb.mxu3 %v1399_v21  ;;  %v1483_v1 = vor.u32 %v1741_v60, %v1480_v62  ;;  %v1570_v21 = vld [vmem:[#allocation5 + $0x230] sm:$0xf]  ;;  %v1770_v60 = vld [vmem:[#allocation7 + $0x28] sm:$0xff]  ;;  %v1780_v62 = vld [vmem:[#allocation7 + $0x78] sm:$0xff] }
  0x59   :  { %v1571_v29 = vor.u32 %v1764_v22, %v1570_v21  ;;  %v1783_v21 = vld [vmem:[#allocation7 + $0x90] sm:$0xff] }
  0x5a   :  { %861 = vmatpush.bf16.msra.mxu0 %v1543_v13  ;;  %v110_v13 = vperm.slane %v108_v6, 0  ;;  %v1788_v6 = vld [vmem:[#allocation7 + $0xb8] sm:$0xff] }
  0x5b   :  { %875 = vmatpush.bf16.msra.mxu1 %v1355_v30 }
  0x5c   :  { %889 = vmatpush.bf16.msra.mxu2 %v1451_v15  ;;  %852 = vmatpush.bf16.msrb.mxu3 %v1387_v33 }
  0x5e   :  { %862 = vmatpush.bf16.msra.mxu0 %v1531_v25 }
  0x5f   :  { %876 = vmatpush.bf16.msra.mxu1 %v1343_v42 }
  0x60   :  { %890 = vmatpush.bf16.msra.mxu2 %v1439_v27 }
  0x62   :  { %863 = vmatpush.bf16.msra.mxu0 %v1519_v37 }
  0x63   :  { %877 = vmatpush.bf16.msra.mxu1 %v1331_v51  ;;  %v1510_v51 = vld [vmem:[#allocation5 + $0x1b8] sm:$0xf] }
  0x64   :  { %891 = vmatpush.bf16.msra.mxu2 %v1427_v39  ;;  %v1546_v39 = vld [vmem:[#allocation5 + $0x200] sm:$0xf]  ;;  %v1511_v53 = vor.u32 %v1749_v52, %v1510_v51 }
  0x65   :  { %v1547_v44 = vor.u32 %v1758_v40, %v1546_v39 }
  0x66   :  { %864 = vmatpush.bf16.msra.mxu0 %v1507_v46  ;;  %v1755_v46 = vld [vmem:[#allocation5 + $0x1f0] sm:$0xf0] }
  0x67   :  { %878 = vmatpush.bf16.msra.mxu1 %v1319_v61  ;;  %v1535_v47 = vor.u32 %v1755_v46, %v1534_v45  ;;  %v1769_v61 = vld [vmem:[#allocation7 + $0x20] sm:$0xff] }
  0x68   :  { %892 = vmatpush.bf16.msra.mxu2 %v1415_v48  ;;  %v1522_v48 = vld [vmem:[#allocation5 + $0x1d0] sm:$0xf] }
  0x69   :  { %v1523_v50 = vor.u32 %v1752_v49, %v1522_v48 }
  0x6a   :  { %865 = vmatpush.bf16.msra.mxu0 %v1495_v55  ;;  %v1746_v55 = vld [vmem:[#allocation5 + $0x1a8] sm:$0xf0] }
  0x6b   :  { %879 = vmatpush.bf16.msra.mxu1 %v1307_v5  ;;  %v1499_v56 = vor.u32 %v1746_v55, %v1498_v54  ;;  %v1765_v5 = vld [vmem:[#allocation7] sm:$0xff] }
  0x6c   :  { %893 = vmatpush.bf16.msra.mxu2 %v1403_v57  ;;  %v1486_v57 = vld [vmem:[#allocation5 + $0x188] sm:$0xf] }
  0x6d   :  { %v1487_v59 = vor.u32 %v1743_v58, %v1486_v57 }
  0x6e   :  { %866 = vmatpush.bf16.msra.mxu0 %v1483_v1  ;;  %v1767_v1 = vld [vmem:[#allocation7 + $0x10] sm:$0xff] }
  0x6f   :  { %880 = vmatpush.bf16.msra.mxu1 %v1295_v11  ;;  %v1774_v11 = vld [vmem:[#allocation7 + $0x48] sm:$0xff] }
  0x70   :  { %894 = vmatpush.bf16.msra.mxu2 %v1391_v2  ;;  %v1778_v2 = vld [vmem:[#allocation7 + $0x68] sm:$0xff] }
  0xae   :  { %v259_v7 = vpop.f32.mrf.mxu0 }
  0xaf   :  { %v273_v10 = vpop.f32.mrf.mxu1  ;;  %v260_v15 = vadd.f32 %v259_v7, %v110_v13  ;;  %v1776_v7 = vld [vmem:[#allocation7 + $0x58] sm:$0xff] }
  0xb0   :  { %v274_v14 = vadd.f32 %v273_v10, %v111_v12  ;;  %v1786_v10 = vld [vmem:[#allocation7 + $0xa8] sm:$0xff] }
  0xb1   :  { %v292_v25 = vmax.f32 %v260_v15, 0.0  ;;  %v1773_v15 = vld [vmem:[#allocation7 + $0x40] sm:$0xff] }
  0xb2   :  { %v293_v23 = vmax.f32 %v274_v14, 0.0  ;;  %v397_v14 = vld [vmem:[%s1980_s4] sm:$0x7] }
  0xb3   :  { %v401_v51 = vperm.slane %v397_v14, 2 }
  0xb6   :  { %v287_v16 = vpop.f32.mrf.mxu2  ;;  %v261_v18 = vpop.f32.mrf.mxu0 }
  0xb7   :  { %v262_v19 = vadd.f32 %v261_v18, %v110_v13  ;;  %v275_v20 = vpop.f32.mrf.mxu1  ;;  %v288_v27 = vadd.f32 %v287_v16, %v112_v17  ;;  %v399_v16 = vperm.slane %v397_v14, 0 }
  0xb8   :  { %v276_v24 = vadd.f32 %v275_v20, %v111_v12  ;;  %v1785_v12 = vld [vmem:[#allocation7 + $0xa0] sm:$0xff] }
  0xb9   :  { %v295_v26 = vmax.f32 %v262_v19, 0.0  ;;  %v294_v36 = vmax.f32 %v288_v27, 0.0 }
  0xba   :  { %v296_v28 = vmax.f32 %v276_v24, 0.0  ;;  %v1782_v24 = vld [vmem:[#allocation7 + $0x88] sm:$0xff] }
  0xbb   :  { %v298_v30 = vpack.c.bf16 %v295_v26, %v292_v25 }
  0xbc   :  { %v299_v33 = vpack.c.bf16 %v296_v28, %v293_v23 }
  0xbd   :  { %797 = vmatmul.bf16.vlgmr.msra.gmra.mxu3 %v298_v30  ;;  %839 = vmatmul.bf16.vlgmr.msrb.gmra.mxu2 %v298_v30 }
  0xbe   :  { %v289_v34 = vpop.f32.mrf.mxu2  ;;  %811 = vmatmul.bf16.vlgmr.msrb.gmra.mxu0 %v299_v33  ;;  %901 = vmatpush.bf16.msra.mxu3 %v1571_v29 }
  0xbf   :  { %v290_v37 = vadd.f32 %v289_v34, %v112_v17  ;;  %1120 = vmatpush.bf16.msrb.mxu0 %v1772_v35  ;;  %1148 = vmatpush.bf16.msrb.mxu2 %v1788_v6  ;;  %v1784_v17 = vld [vmem:[#allocation7 + $0x98] sm:$0xff]  ;;  %v400_v34 = vperm.slane %v397_v14, 1 }
  0xc1   :  { %v297_v42 = vmax.f32 %v290_v37, 0.0 }
  0xc2   :  { %902 = vmatpush.bf16.msra.mxu3 %v1559_v38 }
  0xc3   :  { %v300_v43 = vpack.c.bf16 %v297_v42, %v294_v36  ;;  %1121 = vmatpush.bf16.msrb.mxu0 %v1771_v41  ;;  %1149 = vmatpush.bf16.msrb.mxu2 %v1787_v8 }
  0xc5   :  { %825 = vmatmul.bf16.vlgmr.msrb.gmra.mxu1 %v300_v43 }
  0xc6   :  { %903 = vmatpush.bf16.msra.mxu3 %v1547_v44  ;;  %1134 = vmatpush.bf16.msrb.mxu1 %v1780_v62 }
  0xc7   :  { %1122 = vmatpush.bf16.msrb.mxu0 %v1770_v60  ;;  %1150 = vmatpush.bf16.msrb.mxu2 %v1786_v10 }
  0xca   :  { %904 = vmatpush.bf16.msra.mxu3 %v1535_v47  ;;  %1135 = vmatpush.bf16.msrb.mxu1 %v1779_v0 }
  0xcb   :  { %1123 = vmatpush.bf16.msrb.mxu0 %v1769_v61  ;;  %1151 = vmatpush.bf16.msrb.mxu2 %v1785_v12 }
  0xcd   :  { %853 = vmatmul.bf16.vlgmr.msrb.gmra.mxu3 %v299_v33  ;;  %895 = vmatmul.bf16.vlgmr.msra.gmra.mxu2 %v299_v33 }
  0xce   :  { %867 = vmatmul.bf16.vlgmr.msra.gmra.mxu0 %v300_v43  ;;  %905 = vmatpush.bf16.msra.mxu3 %v1523_v50 }
  0xcf   :  { %1124 = vmatpush.bf16.msrb.mxu0 %v1768_v63  ;;  %1136 = vmatpush.bf16.msrb.mxu1 %v1778_v2 }
  0xd0   :  { %1152 = vmatpush.bf16.msrb.mxu2 %v1784_v17 }
  0xd2   :  { %906 = vmatpush.bf16.msra.mxu3 %v1511_v53 }
  0xd3   :  { %1125 = vmatpush.bf16.msrb.mxu0 %v1767_v1  ;;  %1137 = vmatpush.bf16.msrb.mxu1 %v1777_v4  ;;  %v1799_v4 = vld [vmem:[%s1982_s6] ss:$0 sm:$0xff]  ;;  %s1910_s6 = smov 128  }
  0xd4   :  { %1153 = vmatpush.bf16.msrb.mxu2 %v1783_v21 }
  0xd5   :  { %881 = vmatmul.bf16.vlgmr.msra.gmra.mxu1 %v298_v30  ;;  %v1781_v30 = vld [vmem:[#allocation7 + $0x80] sm:$0xff] }
  0xd6   :  { %907 = vmatpush.bf16.msra.mxu3 %v1499_v56 }
  0xd7   :  { %1126 = vmatpush.bf16.msrb.mxu0 %v1766_v3  ;;  %1138 = vmatpush.bf16.msrb.mxu1 %v1776_v7 }
  0xd8   :  { %1154 = vmatpush.bf16.msrb.mxu2 %v1782_v24 }
  0xda   :  { %908 = vmatpush.bf16.msra.mxu3 %v1487_v59 }
  0xdb   :  { %1127 = vmatpush.bf16.msrb.mxu0 %v1765_v5  ;;  %1139 = vmatpush.bf16.msrb.mxu1 %v1775_v9 }
  0xdc   :  { %1155 = vmatpush.bf16.msrb.mxu2 %v1781_v30 }
  0xdd   :  { %909 = vmatmul.bf16.vlgmr.msra.gmra.mxu3 %v300_v43 }
  0xdf   :  { %1140 = vmatpush.bf16.msrb.mxu1 %v1774_v11 }
  0xe3   :  { %1141 = vmatpush.bf16.msrb.mxu1 %v1773_v15 }
 0x13b   :  { %v812_v13 = vpop.f32.mrf.mxu0 }
 0x140   :  { %v798_v18 = vpop.f32.mrf.mxu3  ;;  %v840_v25 = vpop.f32.mrf.mxu2 }
 0x141   :  { %v799_v20 = vadd.f32 %v798_v18, %v399_v16  ;;  %v841_v40 = vadd.f32 %v840_v25, %v400_v34 }
 0x142   :  { %v826_v19 = vpop.f32.mrf.mxu1 }
 0x143   :  { %v814_v22 = vpop.f32.mrf.mxu0  ;;  %v813_v23 = vadd.f32 %v812_v13, %v799_v20 }
 0x145   :  { %v827_v28 = vadd.f32 %v826_v19, %v813_v23 }
 0x147   :  { %v915_v33 = vmax.f32 %v827_v28, 0.0 }
 0x148   :  { %v800_v26 = vpop.f32.mrf.mxu3  ;;  %v842_v39 = vpop.f32.mrf.mxu2 }
 0x149   :  { %v801_v27 = vadd.f32 %v800_v26, %v399_v16  ;;  %v843_v43 = vadd.f32 %v842_v39, %v400_v34 }
 0x14a   :  { %v828_v31 = vpop.f32.mrf.mxu1 }
 0x14b   :  { %v815_v29 = vadd.f32 %v814_v22, %v801_v27  ;;  %v868_v36 = vpop.f32.mrf.mxu0 }
 0x14d   :  { %v829_v32 = vadd.f32 %v828_v31, %v815_v29 }
 0x14f   :  { %v918_v35 = vmax.f32 %v829_v32, 0.0 }
 0x150   :  { %v854_v37 = vpop.f32.mrf.mxu3  ;;  %v896_v49 = vpop.f32.mrf.mxu2 }
 0x151   :  { %v921_v38 = vpack.c.bf16 %v918_v35, %v915_v33  ;;  %v855_v41 = vadd.f32 %v854_v37, %v841_v40 }
 0x152   :  { %v882_v42 = vpop.f32.mrf.mxu1 }
 0x153   :  { %1128 = vmatmul.bf16.vlgmr.msrb.gmra.mxu0 %v921_v38  ;;  %v869_v45 = vadd.f32 %v868_v36, %v855_v41  ;;  %v870_v47 = vpop.f32.mrf.mxu0  ;;  %v883_v56 = vadd.f32 %v882_v42, %v401_v51 }
 0x155   :  { %v916_v50 = vmax.f32 %v869_v45, 0.0  ;;  %v897_v58 = vadd.f32 %v896_v49, %v883_v56 }
 0x158   :  { %v856_v44 = vpop.f32.mrf.mxu3  ;;  %v898_v59 = vpop.f32.mrf.mxu2 }
 0x159   :  { %v857_v46 = vadd.f32 %v856_v44, %v843_v43 }
 0x15a   :  { %v884_v54 = vpop.f32.mrf.mxu1 }
 0x15b   :  { %v871_v48 = vadd.f32 %v870_v47, %v857_v46  ;;  %v885_v57 = vadd.f32 %v884_v54, %v401_v51 }
 0x15d   :  { %v919_v52 = vmax.f32 %v871_v48, 0.0  ;;  %v899_v60 = vadd.f32 %v898_v59, %v885_v57 }
 0x15f   :  { %v922_v53 = vpack.c.bf16 %v919_v52, %v916_v50 }
 0x160   :  { %v910_v55 = vpop.f32.mrf.mxu3 }
 0x161   :  { %1142 = vmatmul.bf16.vlgmr.msrb.gmra.mxu1 %v922_v53  ;;  %v911_v61 = vadd.f32 %v910_v55, %v897_v58 }
 0x163   :  { %v917_v0 = vmax.f32 %v911_v61, 0.0 }
 0x168   :  { %v912_v62 = vpop.f32.mrf.mxu3 }
 0x169   :  { %v913_v63 = vadd.f32 %v912_v62, %v899_v60 }
 0x16b   :  { %v920_v1 = vmax.f32 %v913_v63, 0.0 }
 0x16d   :  { %v923_v2 = vpack.c.bf16 %v920_v1, %v917_v0 }
 0x16f   :  { %1156 = vmatmul.bf16.vlgmr.msrb.gmra.mxu2 %v923_v2 }
 0x1d0   :  { %v1129_v3 = vpop.f32.mrf.mxu0 }
 0x1d1   :  { %v1130_v6 = vadd.f32 %v1799_v4, %v1129_v3 }
 0x1d8   :  { %v1131_v10 = vpop.f32.mrf.mxu0 }
 0x1d9   :  { %v1132_v12 = vadd.f32 %v1799_v4, %v1131_v10 }
 0x1de   :  { %v1143_v5 = vpop.f32.mrf.mxu1 }
 0x1df   :  { %v1144_v7 = vadd.f32 %v1143_v5, %v1130_v6 }
 0x1e6   :  { %v1145_v11 = vpop.f32.mrf.mxu1 }
 0x1e7   :  { %v1146_v13 = vadd.f32 %v1145_v11, %v1132_v12 }
 0x1f2   :  { %v1157_v8 = vpop.f32.mrf.mxu2 }
 0x1f3   :  { %v1158_v9 = vadd.f32 %v1157_v8, %v1144_v7 }
 0x1f5   :  { %1162 = vst [vmem:[#allocation8] sm:$0xff] %v1158_v9 }
 0x1fa   :  { %v1159_v14 = vpop.f32.mrf.mxu2 }
 0x1fb   :  { %v1160_v15 = vadd.f32 %v1159_v14, %v1146_v13 }
 0x1fd   :  { %1163 = vst [vmem:[#allocation8 + $0x8] sm:$0xff] %v1160_v15 }
 0x1fe   :  { %1176 = dma.vmem_to_hbm [thread:$0]  %s1169_s23, 256, %s1171_s26, [#allocation4], %s1910_s6, %s1910_s6, %s1911_s27  }
 0x1ff   :  { %1900 = dma.done.wait [#allocation4], 256  }
 0x200   :  { %1901 = vsyncadd [#allocation4], 4294967040 }
 0x201   :  { %1181 = vsyncpa [#allocation3], 1 }
 0x202   :  { %1182 = vsyncpa [#allocation6], 1 }
 0x203   :  { %1183 = vsyncpa [#allocation4], 1 }

</bundles_post_ra>
